<compile_context>
chip_gen: v5e
topology: v5e:2x2
jax: 0.10.0
libtpu: 0.0.40
codegen_flags: <defaults>
</compile_context>

<pallas_src>
import math
import functools

import jax
import jax.numpy as jnp
from jax import lax
from jax.experimental import pallas as pl
from jax.experimental.pallas import tpu as pltpu


NEG_INF = -1e30  # large finite negative avoids (-inf)-(-inf) NaN corner cases


def _pick_tile(dim, target):
    """Largest tile <= target that divides dim; full dim if dim <= target."""
    if dim <= target:
        return dim
    t = target
    while dim % t != 0 and t > 8:
        t //= 2
    return t if dim % t == 0 else dim


# ---------------------------------------------------------------------------
# Tiled linear:  y = x @ w.T   with  x:(M,K)  w:(N,K) (torch layout)
# ---------------------------------------------------------------------------

def _linear_kernel(x_ref, w_ref, o_ref, acc_ref):
    @pl.when(pl.program_id(2) == 0)
    def _():
        acc_ref[...] = jnp.zeros_like(acc_ref)

    # x block (tm, tk), w block (tn, tk): contract the K (last) dims directly
    # so the (N, K) weight never needs an explicit transpose.
    acc_ref[...] += lax.dot_general(
        x_ref[...].astype(jnp.bfloat16),
        w_ref[...].astype(jnp.bfloat16),
        dimension_numbers=(((1,), (1,)), ((), ())),
        preferred_element_type=jnp.float32,
    )

    @pl.when(pl.program_id(2) == pl.num_programs(2) - 1)
    def _():
        o_ref[...] = acc_ref[...].astype(o_ref.dtype)


def linear(x, w, *, tm=256, tn=256, tk=512):
    """x: (M, K), w: (N, K) torch-style weight -> x @ w.T : (M, N)."""
    M, K = x.shape
    N, K2 = w.shape
    assert K == K2
    tm = _pick_tile(M, tm)
    tn = _pick_tile(N, tn)
    tk = _pick_tile(K, tk)
    grid = (M // tm, N // tn, K // tk)
    return pl.pallas_call(
        _linear_kernel,
        out_shape=jax.ShapeDtypeStruct((M, N), x.dtype),
        grid_spec=pltpu.PrefetchScalarGridSpec(
            num_scalar_prefetch=0,
            grid=grid,
            in_specs=[
                pl.BlockSpec((tm, tk), lambda i, j, k: (i, k)),
                pl.BlockSpec((tn, tk), lambda i, j, k: (j, k)),
            ],
            out_specs=pl.BlockSpec((tm, tn), lambda i, j, k: (i, j)),
            scratch_shapes=[pltpu.VMEM((tm, tn), jnp.float32)],
        ),
        compiler_params=pltpu.CompilerParams(
            dimension_semantics=("parallel", "parallel", "arbitrary"),
            vmem_limit_bytes=48 * 1024 * 1024,
        ),
    )(x, w)


# ---------------------------------------------------------------------------
# Output projection fused with the head-major -> token-major layout change:
#   attn_out: (B, H, S, D),  w_h: (H, dim, D)  ->  (B, S, dim)
#   result[b, s, o] = sum_{h, d} attn_out[b, h, s, d] * wo[o, h*D + d]
# Heads form the trailing reduction axis, so the transpose never touches HBM.
# ---------------------------------------------------------------------------

def _out_proj_kernel(x_ref, w_ref, o_ref, acc_ref):
    @pl.when(pl.program_id(3) == 0)
    def _():
        acc_ref[...] = jnp.zeros_like(acc_ref)

    acc_ref[...] += lax.dot_general(
        x_ref[0, 0].astype(jnp.bfloat16),    # (tm, D)
        w_ref[0].astype(jnp.bfloat16),       # (tn, D)
        dimension_numbers=(((1,), (1,)), ((), ())),
        preferred_element_type=jnp.float32,
    )

    @pl.when(pl.program_id(3) == pl.num_programs(3) - 1)
    def _():
        o_ref[0] = acc_ref[...].astype(o_ref.dtype)


def out_proj(attn_out, w_h, *, tm=256, tn=256):
    """attn_out: (B, H, S, D), w_h: (H, N, D) -> (B, S, N)."""
    B, H, S, D = attn_out.shape
    H2, N, D2 = w_h.shape
    assert H == H2 and D == D2
    tm = _pick_tile(S, tm)
    tn = _pick_tile(N, tn)
    grid = (B, S // tm, N // tn, H)
    return pl.pallas_call(
        _out_proj_kernel,
        out_shape=jax.ShapeDtypeStruct((B, S, N), attn_out.dtype),
        grid_spec=pltpu.PrefetchScalarGridSpec(
            num_scalar_prefetch=0,
            grid=grid,
            in_specs=[
                pl.BlockSpec((1, 1, tm, D), lambda b, i, j, h: (b, h, i, 0)),
                pl.BlockSpec((1, tn, D), lambda b, i, j, h: (h, j, 0)),
            ],
            out_specs=pl.BlockSpec((1, tm, tn), lambda b, i, j, h: (b, i, j)),
            scratch_shapes=[pltpu.VMEM((tm, tn), jnp.float32)],
        ),
        compiler_params=pltpu.CompilerParams(
            dimension_semantics=("parallel", "parallel", "parallel", "arbitrary"),
            vmem_limit_bytes=48 * 1024 * 1024,
        ),
    )(attn_out, w_h)


# ---------------------------------------------------------------------------
# Flash attention (online softmax) with GQA head packing
# ---------------------------------------------------------------------------

def _flash_attn_kernel(q_ref, k_ref, v_ref, o_ref, m_ref, l_ref, acc_ref,
                       *, scale, causal, tq, tk):
    qi = pl.program_id(2)
    ki = pl.program_id(3)

    @pl.when(ki == 0)
    def _():
        m_ref[...] = jnp.full_like(m_ref, NEG_INF)
        l_ref[...] = jnp.zeros_like(l_ref)
        acc_ref[...] = jnp.zeros_like(acc_ref)

    def _compute():
        q = q_ref[0].astype(jnp.bfloat16)     # (n_rep, tq, D)
        k = k_ref[0, 0].astype(jnp.bfloat16)  # (tk, D)
        v = v_ref[0, 0].astype(jnp.bfloat16)  # (tk, D)

        # scores (n_rep, tq, tk): contract head_dim directly, no k transpose.
        s = lax.dot_general(
            q, k, dimension_numbers=(((2,), (1,)), ((), ())),
            preferred_element_type=jnp.float32) * scale

        if causal:
            row = lax.broadcasted_iota(jnp.int32, (1, tq, tk), 1) + qi * tq
            col = lax.broadcasted_iota(jnp.int32, (1, tq, tk), 2) + ki * tk
            s = jnp.where(row >= col, s, NEG_INF)

        m_prev = m_ref[...]                                    # (n_rep, tq, 1)
        m_new = jnp.maximum(m_prev, jnp.max(s, axis=-1, keepdims=True))
        alpha = jnp.exp(m_prev - m_new)
        p = jnp.exp(s - m_new)                                 # f32
        l_ref[...] = alpha * l_ref[...] + jnp.sum(p, axis=-1, keepdims=True)
        pv = lax.dot_general(
            p.astype(jnp.bfloat16), v,
            dimension_numbers=(((2,), (0,)), ((), ())),
            preferred_element_type=jnp.float32)                # (n_rep, tq, D)
        acc_ref[...] = alpha * acc_ref[...] + pv
        m_ref[...] = m_new

    if causal:
        # Skip kv tiles entirely in the future of this q tile.
        @pl.when(ki * tk <= qi * tq + (tq - 1))
        def _():
            _compute()
    else:
        _compute()

    @pl.when(ki == pl.num_programs(3) - 1)
    def _():
        inv_l = pl.reciprocal(l_ref[...], approx=True)
        o_ref[0] = (acc_ref[...] * inv_l).astype(o_ref.dtype)


def attention_core(q, k, v, *, causal, tq=256, tk=256):
    """q: (B, H, S, D); k, v: (B, H_kv, S, D) -> (B, H, S, D).

    GQA: all n_rep = H // H_kv query heads sharing a kv head are processed in
    one grid step, so each K/V tile is DMA'd once per kv head.
    """
    B, H, S, D = q.shape
    H_kv = k.shape[1]
    n_rep = H // H_kv
    tq = _pick_tile(S, tq)
    tk = _pick_tile(S, tk)
    scale = 1.0 / math.sqrt(D)
    kernel = functools.partial(
        _flash_attn_kernel, scale=scale, causal=causal, tq=tq, tk=tk)
    grid = (B, H_kv, S // tq, S // tk)
    return pl.pallas_call(
        kernel,
        out_shape=jax.ShapeDtypeStruct((B, H, S, D), q.dtype),
        grid_spec=pltpu.PrefetchScalarGridSpec(
            num_scalar_prefetch=0,
            grid=grid,
            in_specs=[
                # q: block of n_rep consecutive query heads of one kv group
                pl.BlockSpec((1, n_rep, tq, D), lambda b, h, qi, ki: (b, h, qi, 0)),
                pl.BlockSpec((1, 1, tk, D), lambda b, h, qi, ki: (b, h, ki, 0)),
                pl.BlockSpec((1, 1, tk, D), lambda b, h, qi, ki: (b, h, ki, 0)),
            ],
            out_specs=pl.BlockSpec(
                (1, n_rep, tq, D), lambda b, h, qi, ki: (b, h, qi, 0)),
            scratch_shapes=[
                pltpu.VMEM((n_rep, tq, 1), jnp.float32),   # running max
                pltpu.VMEM((n_rep, tq, 1), jnp.float32),   # running sum
                pltpu.VMEM((n_rep, tq, D), jnp.float32),   # output accumulator
            ],
        ),
        compiler_params=pltpu.CompilerParams(
            dimension_semantics=("parallel", "parallel", "parallel", "arbitrary"),
            vmem_limit_bytes=48 * 1024 * 1024,
        ),
    )(q, k, v)


# ---------------------------------------------------------------------------
# Rotary embedding (real cos/sin math, plain JAX — fuses with adjacent ops)
# ---------------------------------------------------------------------------

def precompute_freqs_cis(head_dim, seq_len, theta=10000.0):
    freqs = 1.0 / (
        theta ** (jnp.arange(0, head_dim, 2, dtype=jnp.float32) / head_dim)
    )
    t = jnp.arange(seq_len, dtype=jnp.float32)
    angles = jnp.outer(t, freqs)                # (S, D/2)
    return jnp.cos(angles), jnp.sin(angles)     # real cos/sin instead of complex


def apply_rotary_emb(xq, xk, freqs):
    # xq: (B, S, H, D); pairs (even, odd) rotated by (cos, sin), interleaved back.
    cos, sin = freqs
    c = cos[None, :, None, :]                   # (1, S, 1, D/2)
    s = sin[None, :, None, :]

    def rot(x):
        xr = x[..., 0::2].astype(jnp.float32)
        xi = x[..., 1::2].astype(jnp.float32)
        out_r = xr * c - xi * s
        out_i = xr * s + xi * c
        out = jnp.stack([out_r, out_i], axis=-1)
        return out.reshape(x.shape).astype(x.dtype)

    return rot(xq), rot(xk)


# ---------------------------------------------------------------------------
# Attention module
# ---------------------------------------------------------------------------

class AttentionPallas:
    def __init__(self, dim, n_heads, n_kv_heads, key):
        self.dim = dim
        self.n_heads = n_heads
        self.n_kv_heads = n_heads if n_kv_heads is None else n_kv_heads
        self.n_rep = n_heads // self.n_kv_heads
        self.head_dim = dim // n_heads
        k1, k2, k3, k4 = jax.random.split(key, 4)
        std = 0.02
        # Weights in torch (out_features, in_features) layout, f32 in HBM;
        # kernels cast blocks to bf16 for the MXU (accumulation stays f32).
        self.wq = std * jax.random.normal(k1, (n_heads * self.head_dim, dim), jnp.float32)
        self.wk = std * jax.random.normal(k2, (self.n_kv_heads * self.head_dim, dim), jnp.float32)
        self.wv = std * jax.random.normal(k3, (self.n_kv_heads * self.head_dim, dim), jnp.float32)
        self.wo = std * jax.random.normal(k4, (dim, n_heads * self.head_dim), jnp.float32)
        # Fused QKV weight: one matmul, x read from HBM once.
        self.wqkv = jnp.concatenate([self.wq, self.wk, self.wv], axis=0)
        # Output-proj weight pre-laid-out as (H, dim, D) so the out_proj kernel
        # can consume head-major attention output directly (no HBM transpose).
        self.wo_h = jnp.transpose(
            self.wo.reshape(dim, n_heads, self.head_dim), (1, 0, 2))

    def __call__(self, x, freqs, mask):
        bsz, seqlen, dim = x.shape
        xf = x.reshape(bsz * seqlen, dim)

        q_dim = self.n_heads * self.head_dim
        kv_dim = self.n_kv_heads * self.head_dim
        qkv = linear(xf, self.wqkv)                       # fused QKV projection
        xq = qkv[:, :q_dim].reshape(bsz, seqlen, self.n_heads, self.head_dim)
        xk = qkv[:, q_dim:q_dim + kv_dim].reshape(bsz, seqlen, self.n_kv_heads, self.head_dim)
        xv = qkv[:, q_dim + kv_dim:].reshape(bsz, seqlen, self.n_kv_heads, self.head_dim)

        xq, xk = apply_rotary_emb(xq, xk, freqs)

        # Head-major layout for the attention kernel (these transposes fuse
        # with the rotary elementwise ops / reshape glue in XLA).
        q = jnp.transpose(xq, (0, 2, 1, 3))  # (B, H, S, D)
        k = jnp.transpose(xk, (0, 2, 1, 3))  # (B, H_kv, S, D)
        v = jnp.transpose(xv, (0, 2, 1, 3))  # (B, H_kv, S, D)

        # mask is not None  ==>  standard causal mask, generated in-kernel.
        out = attention_core(q, k, v, causal=(mask is not None))   # (B, H, S, D)
        # Output projection fused with the head-major -> token-major transpose.
        return out_proj(out, self.wo_h)                             # (B, S, dim)


# ---------------------------------------------------------------------------
# Pure-JAX reference (mirrors the PyTorch forward) for correctness check
# ---------------------------------------------------------------------------

def reference_forward(attn, x, freqs, mask):
    bsz, seqlen, dim = x.shape
    xq = x @ attn.wq.T
    xk = x @ attn.wk.T
    xv = x @ attn.wv.T
    xq = xq.reshape(bsz, seqlen, attn.n_heads, attn.head_dim)
    xk = xk.reshape(bsz, seqlen, attn.n_kv_heads, attn.head_dim)
    xv = xv.reshape(bsz, seqlen, attn.n_kv_heads, attn.head_dim)
    xq, xk = apply_rotary_emb(xq, xk, freqs)
    keys = jnp.repeat(xk, attn.n_rep, axis=2)
    values = jnp.repeat(xv, attn.n_rep, axis=2)
    q = jnp.transpose(xq, (0, 2, 1, 3))
    k = jnp.transpose(keys, (0, 2, 1, 3))
    v = jnp.transpose(values, (0, 2, 1, 3))
    scores = jnp.einsum("bhqd,bhkd->bhqk", q, k) / math.sqrt(attn.head_dim)
    if mask is not None:
        scores = scores + mask
    scores = jax.nn.softmax(scores.astype(jnp.float32), axis=-1).astype(q.dtype)
    out = jnp.einsum("bhqk,bhkd->bhqd", scores, v)
    out = jnp.transpose(out, (0, 2, 1, 3)).reshape(bsz, seqlen, -1)
    return out @ attn.wo.T


if __name__ == "__main__":
    # Small config: dim=32, n_heads=4, n_kv_heads=2 (GQA, n_rep=2), head_dim=8
    batch, seqlen, dim, n_heads, n_kv_heads = 2, 8, 32, 4, 2

    key = jax.random.PRNGKey(0)
    k_param, k_x = jax.random.split(key)

    attn = AttentionPallas(dim, n_heads, n_kv_heads, k_param)

    x = jax.random.normal(k_x, (batch, seqlen, dim), jnp.float32)
    freqs = precompute_freqs_cis(attn.head_dim, seqlen)
    # Causal mask for the reference; the Pallas kernel builds it in-kernel.
    mask = jnp.where(
        jnp.triu(jnp.ones((seqlen, seqlen), dtype=bool), k=1),
        -jnp.inf, 0.0
    ).astype(jnp.float32)

    out = attn(x, freqs, mask)
    out = jax.block_until_ready(out)

    ref = reference_forward(attn, x, freqs, mask)
    assert out.shape == (batch, seqlen, dim)
    # bf16 MXU operands vs f32 reference -> loosened tolerance.
    assert jnp.allclose(out, ref, atol=2e-2, rtol=2e-2), "mismatch vs reference"

    print("KERNEL_OK")
</pallas_src>

<mosaic_0001>
module attributes {stable_mosaic.version = 11 : i64} {
  func.func @_linear_kernel(%arg0: i32, %arg1: i32, %arg2: i32, %arg3: memref<16x32xf32, #tpu.memory_space<vmem>>, %arg4: memref<64x32xf32, #tpu.memory_space<vmem>>, %arg5: memref<16x64xf32, #tpu.memory_space<vmem>>, %arg6: memref<16x64xf32, #tpu.memory_space<vmem>>) attributes {dimension_semantics = [#tpu.dimension_semantics<parallel>, #tpu.dimension_semantics<parallel>, #tpu.dimension_semantics<arbitrary>], iteration_bounds = array<i64: 1, 1, 1>, scalar_prefetch = 0 : i64, scratch_operands = 1 : i64, tpu.core_type = #tpu.core_type<tc>, window_params = [{transform_indices = @transform_0, window_bounds = array<i64: 16, 32>}, {transform_indices = @transform_1, window_bounds = array<i64: 64, 32>}, {transform_indices = @transform_2, window_bounds = array<i64: 16, 64>}]} {
    %c0_i32 = arith.constant 0 : i32
    %0 = arith.cmpi eq, %arg2, %c0_i32 : i32
    %1 = arith.extui %0 : i1 to i32
    %c0_i32_0 = arith.constant 0 : i32
    %2 = arith.cmpi ne, %1, %c0_i32_0 : i32
    scf.if %2 {
      %cst_10 = arith.constant 0.000000e+00 : f32
      %14 = vector.broadcast %cst_10 : f32 to vector<16x64xf32>
      %c0_11 = arith.constant 0 : index
      %c0_12 = arith.constant 0 : index
      %15 = vector.load %arg6[%c0_11, %c0_12] : memref<16x64xf32, #tpu.memory_space<vmem>>, vector<16x64xf32>
      tpu.vector_store %arg6[%c0_11, %c0_12], %14 {strides = array<i32>} : memref<16x64xf32, #tpu.memory_space<vmem>>, vector<16x64xf32>,
    } else {
    }
    %c0 = arith.constant 0 : index
    %c0_1 = arith.constant 0 : index
    %3 = vector.load %arg6[%c0, %c0_1] : memref<16x64xf32, #tpu.memory_space<vmem>>, vector<16x64xf32>
    %c0_2 = arith.constant 0 : index
    %c0_3 = arith.constant 0 : index
    %4 = vector.load %arg3[%c0_2, %c0_3] : memref<16x32xf32, #tpu.memory_space<vmem>>, vector<16x32xf32>
    %5 = arith.truncf %4 : vector<16x32xf32> to vector<16x32xbf16>
    %c0_4 = arith.constant 0 : index
    %c0_5 = arith.constant 0 : index
    %6 = vector.load %arg4[%c0_4, %c0_5] : memref<64x32xf32, #tpu.memory_space<vmem>>, vector<64x32xf32>
    %7 = arith.truncf %6 : vector<64x32xf32> to vector<64x32xbf16>
    %cst = arith.constant dense<0.000000e+00> : vector<16x64xf32>
    %8 = tpu.matmul %5, %7, %cst {dimension_numbers = #tpu.dot_dimension_numbers<[1], [1], [0], [0], [0, 0, 1, 0], [], []>} : vector<16x32xbf16>, vector<64x32xbf16>, vector<16x64xf32> -> vector<16x64xf32>
    %9 = arith.addf %3, %8 : vector<16x64xf32>
    %c0_6 = arith.constant 0 : index
    %c0_7 = arith.constant 0 : index
    %10 = vector.load %arg6[%c0_6, %c0_7] : memref<16x64xf32, #tpu.memory_space<vmem>>, vector<16x64xf32>
    tpu.vector_store %arg6[%c0_6, %c0_7], %9 {strides = array<i32>} : memref<16x64xf32, #tpu.memory_space<vmem>>, vector<16x64xf32>,
    %c0_i32_8 = arith.constant 0 : i32
    %11 = arith.cmpi eq, %arg2, %c0_i32_8 : i32
    %12 = arith.extui %11 : i1 to i32
    %c0_i32_9 = arith.constant 0 : i32
    %13 = arith.cmpi ne, %12, %c0_i32_9 : i32
    scf.if %13 {
      %c0_10 = arith.constant 0 : index
      %c0_11 = arith.constant 0 : index
      %14 = vector.load %arg6[%c0_10, %c0_11] : memref<16x64xf32, #tpu.memory_space<vmem>>, vector<16x64xf32>
      %c0_12 = arith.constant 0 : index
      %c0_13 = arith.constant 0 : index
      %15 = vector.load %arg5[%c0_12, %c0_13] : memref<16x64xf32, #tpu.memory_space<vmem>>, vector<16x64xf32>
      tpu.vector_store %arg5[%c0_12, %c0_13], %14 {strides = array<i32>} : memref<16x64xf32, #tpu.memory_space<vmem>>, vector<16x64xf32>,
    } else {
    }
    return
  }
  func.func @transform_0(%arg0: i32, %arg1: i32, %arg2: i32) -> (i32, i32) {
    %c0_i32 = arith.constant 0 : i32
    return %arg0, %arg2 : i32, i32
  }
  func.func @transform_1(%arg0: i32, %arg1: i32, %arg2: i32) -> (i32, i32) {
    %c0_i32 = arith.constant 0 : i32
    return %arg1, %arg2 : i32, i32
  }
  func.func @transform_2(%arg0: i32, %arg1: i32, %arg2: i32) -> (i32, i32) {
    %c0_i32 = arith.constant 0 : i32
    return %arg0, %arg1 : i32, i32
  }
}

</mosaic_0001>

<bundles_post_ra>
// kernel: tpu_custom_call.1
= control target key start
LH: loop header
LB: loop body
LE: loop exit
PB: predicated region body
PF: predicated region fallthrough
CT: control target
= control target key end

     0   :  { %vm37_vm0 = vcmask 261120   ;;  %vm17_vm1 = vcmask 523264   ;;  %s191_s0 = inlined_call_operand.vmem [shape: f32[16,32], index: 0, kind: input, shape index: {}]   ;;  %s192_s1 = inlined_call_operand.vmem [shape: f32[64,32], index: 1, kind: input, shape index: {}]   ;;  %s193_s2 = inlined_call_operand.hbm [shape: f32[16,64], index: 2, kind: output, shape index: {}]  }
   0x1   :  { %v31_v0 = vld [vmem:[%s192_s1 + $0x30] sm:$0xff]  ;;  %v32_v1 = vld [vmem:[%s192_s1 + $0x38] sm:$0xff]  ;;  %v29_v3 = vld [vmem:[%s192_s1 + $0x20] sm:$0xff] }
   0x2   :  { %v36_v2 = vpack.c.bf16 %v32_v1, %v31_v0  ;;  %v30_v4 = vld [vmem:[%s192_s1 + $0x28] sm:$0xff] }
   0x4   :  { %v51_v5 = vsel %vm37_vm0, %v36_v2, 0 }
   0x5   :  { %7 = vsyncpa [#allocation4], 0  ;;  %57 = vmatpush.bf16.xpose.msra.mxu0 %v51_v5  ;;  %v128_v6 = vmov 0.0   ;;  %v35_v7 = vpack.c.bf16 %v30_v4, %v29_v3  ;;  %v27_v9 = vld [vmem:[%s192_s1 + $0x10] sm:$0xff]  ;;  %v28_v10 = vld [vmem:[%s192_s1 + $0x18] sm:$0xff]  ;;  %s85_s3 = sshll.u32 %s193_s2, 4  ;;  %s86_s3 = int_to_ptr.hbm [resolvable:$true] %s85_s3 }
   0x6   :  { %18 = vst.msk [vmem:[#allocation2] sm:$0xff] %vm17_vm1, %v128_v6  ;;  %v34_v11 = vpack.c.bf16 %v28_v10, %v27_v9  ;;  %v25_v13 = vld [vmem:[%s192_s1] sm:$0xff]  ;;  %v26_v14 = vld [vmem:[%s192_s1 + $0x8] sm:$0xff]  ;;  %s129_s1 = smov [#allocation3]   ;;  %s130_s4 = smov 128  }
   0x7   :  { %19 = vst.msk [vmem:[#allocation2 + $0x8] sm:$0xff] %vm17_vm1, %v128_v6  ;;  %v48_v8 = vsel %vm37_vm0, %v35_v7, 0  ;;  %v33_v15 = vpack.c.bf16 %v26_v14, %v25_v13  ;;  %v22_v17 = vld [vmem:[%s191_s0] sm:$0xff]  ;;  %v23_v18 = vld [vmem:[%s191_s0 + $0x8] sm:$0xff]  ;;  %s83_s29 = sshll.u32 %s129_s1, 4  ;;  %s131_s5 = smov 8   ;;  %s84_s29 = int_to_ptr.vmem [resolvable:$true] %s83_s29 }
   0x8   :  { %v45_v12 = vsel %vm37_vm0, %v34_v11, 0  ;;  %v24_v19 = vpack.c.bf16 %v23_v18, %v22_v17 }
   0x9   :  { %v42_v16 = vsel %vm37_vm0, %v33_v15, 0 }
   0xd   :  { %58 = vmatpush.bf16.xpose.msra.mxu0 %v48_v8  ;;  %v20_v20 = vld [vmem:[#allocation2] sm:$0xff] }
   0xe   :  { %v21_v23 = vld [vmem:[#allocation2 + $0x8] sm:$0xff] }
  0x15   :  { %59 = vmatpush.bf16.xpose.msra.mxu0 %v45_v12 }
  0x1d   :  { %60 = vmatpush.bf16.xpose.msra.mxu0 %v42_v16 }
  0x24   :  { %97 = vmatmul.msk.bf16.vlgmr.msra.gmra.mxu0 %vm37_vm0, %v24_v19 }
  0xa1   :  { %v62_v21 = vpop.f32.mrf.mxu0 }
  0xa2   :  { %v67_v22 = vadd.f32 %v62_v21, %v20_v20 }
  0xa4   :  { %70 = vst.msk [vmem:[#allocation2] sm:$0xff] %vm17_vm1, %v67_v22 }
  0xa9   :  { %v64_v24 = vpop.f32.mrf.mxu0 }
  0xaa   :  { %v68_v25 = vadd.f32 %v64_v24, %v21_v23 }
  0xab   :  { %v75_v26 = vld [vmem:[#allocation2] sm:$0xff] }
  0xac   :  { %71 = vst.msk [vmem:[#allocation2 + $0x8] sm:$0xff] %vm17_vm1, %v68_v25 }
  0xad   :  { %77 = vst.msk [vmem:[#allocation3] sm:$0xff] %vm17_vm1, %v75_v26 }
  0xb3   :  { %v76_v27 = vld [vmem:[#allocation2 + $0x8] sm:$0xff] }
  0xb4   :  { %78 = vst.msk [vmem:[#allocation3 + $0x8] sm:$0xff] %vm17_vm1, %v76_v27 }
  0xb5   :  { %91 = dma.vmem_to_hbm [thread:$0]  %s84_s29, 256, %s86_s3, [#allocation4], %s130_s4, %s130_s4, %s131_s5  }
  0xb6   :  { %126 = dma.done.wait [#allocation4], 256  }
  0xb7   :  { %127 = vsyncadd [#allocation4], 4294967040 }
  0xb8   :  { %96 = vsyncpa [#allocation4], 1 }

</bundles_post_ra>
